<compile_context>
chip_gen: v6e
topology: v6e:2x2x1
jax: 0.10.0
libtpu: 0.0.40
codegen_flags: <defaults>
</compile_context>

<pallas_src>
import jax
import jax.numpy as jnp
from jax import lax
from jax.experimental import pallas as pl
from jax.experimental.pallas import tpu as pltpu

BN_EPS = 1e-5


def _fused_kernel(x_ref, g_ref, w_ref, gamma_ref, beta_ref, o_ref):
    # x_ref:     (Cin, P)        f32  activations (constant block across the grid)
    # g_ref:     (1, Cin)        f32  SE gate logits
    # w_ref:     (tile_co, Cin)  f32  1x1 conv weight tile
    # gamma_ref: (tile_co, 1)    f32  BN affine scale
    # beta_ref:  (tile_co, 1)    f32  BN affine shift
    # o_ref:     (tile_co, P)    f32
    p = o_ref.shape[1]

    # Fold the sigmoid gate into the weight (valid for N == 1):
    #   conv(x * g, W) == conv(x, W * g).  Sigmoid on the EUP in f32, fold in bf16.
    gate = jax.nn.sigmoid(g_ref[...])                                    # (1, Cin) f32
    w_bf = w_ref[...].astype(jnp.bfloat16) * gate.astype(jnp.bfloat16)   # (tile_co, Cin) bf16
    x_bf = x_ref[...].astype(jnp.bfloat16)                               # on-chip cast, no HBM round-trip

    # 1x1 conv as a bf16 MXU matmul with f32 accumulation.
    z = jnp.dot(w_bf, x_bf, preferred_element_type=jnp.float32)          # (tile_co, P) f32

    # BatchNorm2d (training mode): biased batch stats over the P spatial
    # positions, two-pass variance (cancellation-safe), all in f32.
    inv_p = jnp.float32(1.0 / p)
    mean = jnp.sum(z, axis=1, keepdims=True) * inv_p                     # (tile_co, 1)
    zc = z - mean
    var = jnp.sum(zc * zc, axis=1, keepdims=True) * inv_p                # (tile_co, 1), >= 0
    inv = lax.rsqrt(var + BN_EPS)
    o_ref[...] = zc * (inv * gamma_ref[...]) + beta_ref[...]


def sigmoid_mul_conv1x1_bn(x_nchw, gate_nc11, w_oikk, gamma, beta):
    """x_nchw: (1, Cin, H, W); gate_nc11: (1, Cin, 1, 1); w_oikk: (Cout, Cin, 1, 1);
    gamma/beta: (Cout,).  Returns (1, Cout, H, W) in f32."""
    N, Cin, H, W = x_nchw.shape
    Cout = w_oikk.shape[0]
    assert N == 1, "gate folding into the weight assumes batch size 1 (as in the module)"
    P = H * W

    # NCHW is (Cin, H*W)-contiguous for N==1 -> free reshapes, no transposes,
    # no dtype converts in the wrapper.
    x_cp = x_nchw.reshape(Cin, P).astype(jnp.float32)        # (Cin, P)   f32
    g_row = gate_nc11.reshape(1, Cin).astype(jnp.float32)    # (1, Cin)   f32 logits
    w_mat = w_oikk.reshape(Cout, Cin).astype(jnp.float32)    # (Cout,Cin) f32
    gamma_col = gamma.reshape(Cout, 1).astype(jnp.float32)
    beta_col = beta.reshape(Cout, 1).astype(jnp.float32)

    # Cout tiling: 2 independent tiles when cleanly divisible (rows multiple
    # of 8).  "parallel" -> both TensorCores on v7x; also gives DMA/compute
    # overlap on single-core chips.  BN stats reduce only over P, so the
    # split is numerically exact.
    n_tiles = 2 if (Cout % 16 == 0) else 1
    tile_co = Cout // n_tiles

    bytes_accessed = 4 * (Cin * P + Cin + Cout * Cin + 2 * Cout + Cout * P)
    cost = pl.CostEstimate(
        flops=2 * Cout * Cin * P,
        bytes_accessed=bytes_accessed,
        transcendentals=Cin,
    )

    out_cp = pl.pallas_call(
        _fused_kernel,
        out_shape=jax.ShapeDtypeStruct((Cout, P), jnp.float32),
        grid=(n_tiles,),
        in_specs=[
            pl.BlockSpec((Cin, P), lambda i: (0, 0)),        # X: fetched once, resident
            pl.BlockSpec((1, Cin), lambda i: (0, 0)),        # gate logits
            pl.BlockSpec((tile_co, Cin), lambda i: (i, 0)),  # weight tile per grid step
            pl.BlockSpec((tile_co, 1), lambda i: (i, 0)),    # gamma tile
            pl.BlockSpec((tile_co, 1), lambda i: (i, 0)),    # beta tile
        ],
        out_specs=pl.BlockSpec((tile_co, P), lambda i: (i, 0)),
        compiler_params=pltpu.CompilerParams(
            dimension_semantics=("parallel",)),
        cost_estimate=cost,
    )(x_cp, g_row, w_mat, gamma_col, beta_col)

    # (Cout, P) -> (1, Cout, H, W): free reshape, no transpose.
    return out_cp.reshape(N, Cout, H, W)


def _reference_f32(x_nchw, gate_nc11, w_oikk, gamma, beta):
    """Full-f32 semantics of the PyTorch module (training-mode BN)."""
    N, Cin, H, W = x_nchw.shape
    Cout = w_oikk.shape[0]
    P = H * W
    xs = (x_nchw * jax.nn.sigmoid(gate_nc11)).reshape(Cin, P).astype(jnp.float32)
    z = w_oikk.reshape(Cout, Cin).astype(jnp.float32) @ xs
    mean = jnp.mean(z, axis=1, keepdims=True)
    var = jnp.mean((z - mean) ** 2, axis=1, keepdims=True)
    out = (z - mean) / jnp.sqrt(var + BN_EPS) * gamma.reshape(Cout, 1) + beta.reshape(Cout, 1)
    return out.reshape(N, Cout, H, W)


def _reference_matched(x_nchw, gate_nc11, w_oikk, gamma, beta):
    """Same numerics as the kernel (bf16 MXU operands, bf16 gate fold, f32 stats)."""
    N, Cin, H, W = x_nchw.shape
    Cout = w_oikk.shape[0]
    P = H * W
    gate = jax.nn.sigmoid(gate_nc11.reshape(1, Cin).astype(jnp.float32))
    w_s = w_oikk.reshape(Cout, Cin).astype(jnp.bfloat16) * gate.astype(jnp.bfloat16)
    x_b = x_nchw.reshape(Cin, P).astype(jnp.bfloat16)
    z = jnp.dot(w_s, x_b, preferred_element_type=jnp.float32)
    mean = jnp.mean(z, axis=1, keepdims=True)
    zc = z - mean
    var = jnp.mean(zc * zc, axis=1, keepdims=True)
    out = zc * lax.rsqrt(var + BN_EPS) * gamma.reshape(Cout, 1) + beta.reshape(Cout, 1)
    return out.reshape(N, Cout, H, W)


if __name__ == "__main__":
    # Small deterministic shapes consistent with the module's forward
    # (original: N=1, Cin=1344, Cout=224, H=W=14).
    N, Cin, Cout, H, W = 1, 128, 64, 14, 14

    key = jax.random.PRNGKey(0)
    kx, kg, kw = jax.random.split(key, 3)
    x476 = jax.random.normal(kx, (N, Cin, H, W), dtype=jnp.float32)
    x480 = jax.random.normal(kg, (N, Cin, 1, 1), dtype=jnp.float32)
    # Conv2d(Cin, Cout, 1x1, bias=False) weight, deterministic init.
    conv_w = 0.05 * jax.random.normal(kw, (Cout, Cin, 1, 1), dtype=jnp.float32)
    # BatchNorm2d default affine init: weight=1, bias=0.
    bn_gamma = jnp.ones((Cout,), dtype=jnp.float32)
    bn_beta = jnp.zeros((Cout,), dtype=jnp.float32)

    out = sigmoid_mul_conv1x1_bn(x476, x480, conv_w, bn_gamma, bn_beta)
    out = jax.block_until_ready(out)
    assert out.shape == (N, Cout, H, W)

    # Tight check against a matched-precision (bf16 MXU, f32 stats) reference.
    ref_m = _reference_matched(x476, x480, conv_w, bn_gamma, bn_beta)
    assert jnp.allclose(out, ref_m, atol=5e-3, rtol=5e-3), "mismatch vs matched-precision ref"

    # Semantic check against the full-f32 module (tolerance accounts for the
    # bf16 matmul operands; BN output is ~unit scale).
    ref_f = _reference_f32(x476, x480, conv_w, bn_gamma, bn_beta)
    assert jnp.allclose(out, ref_f, atol=5e-2, rtol=5e-2), "mismatch vs f32 reference"

    print("KERNEL_OK")
</pallas_src>

<mosaic_0001>
module attributes {stable_mosaic.version = 11 : i64} {
  func.func @_fused_kernel(%arg0: i32, %arg1: memref<128x196xf32, #tpu.memory_space<vmem>>, %arg2: memref<1x128xf32, #tpu.memory_space<vmem>>, %arg3: memref<32x128xf32, #tpu.memory_space<vmem>>, %arg4: memref<32x1xf32, #tpu.memory_space<vmem>>, %arg5: memref<32x1xf32, #tpu.memory_space<vmem>>, %arg6: memref<32x196xf32, #tpu.memory_space<vmem>>) attributes {dimension_semantics = [#tpu.dimension_semantics<parallel>], iteration_bounds = array<i64: 2>, scalar_prefetch = 0 : i64, scratch_operands = 0 : i64, tpu.core_type = #tpu.core_type<tc>, window_params = [{pipeline_mode = #tpu.pipeline_mode<synchronous>, transform_indices = @transform_0, window_bounds = array<i64: 128, 196>}, {pipeline_mode = #tpu.pipeline_mode<synchronous>, transform_indices = @transform_1, window_bounds = array<i64: 1, 128>}, {transform_indices = @transform_2, window_bounds = array<i64: 32, 128>}, {transform_indices = @transform_3, window_bounds = array<i64: 32, 1>}, {transform_indices = @transform_4, window_bounds = array<i64: 32, 1>}, {transform_indices = @transform_5, window_bounds = array<i64: 32, 196>}]} {
    %c0 = arith.constant 0 : index
    %c0_0 = arith.constant 0 : index
    %0 = vector.load %arg2[%c0, %c0_0] : memref<1x128xf32, #tpu.memory_space<vmem>>, vector<1x128xf32>
    %1 = arith.negf %0 : vector<1x128xf32>
    %2 = math.exp %1 : vector<1x128xf32>
    %cst = arith.constant 1.000000e+00 : f32
    %3 = vector.broadcast %cst : f32 to vector<1x128xf32>
    %4 = arith.addf %3, %2 : vector<1x128xf32>
    %5 = arith.divf %3, %4 : vector<1x128xf32>
    %c0_1 = arith.constant 0 : index
    %c0_2 = arith.constant 0 : index
    %6 = vector.load %arg3[%c0_1, %c0_2] : memref<32x128xf32, #tpu.memory_space<vmem>>, vector<32x128xf32>
    %7 = arith.truncf %6 : vector<32x128xf32> to vector<32x128xbf16>
    %8 = arith.truncf %5 : vector<1x128xf32> to vector<1x128xbf16>
    %9 = vector.broadcast %8 : vector<1x128xbf16> to vector<32x128xbf16>
    %10 = arith.mulf %7, %9 : vector<32x128xbf16>
    %c0_3 = arith.constant 0 : index
    %c0_4 = arith.constant 0 : index
    %11 = vector.load %arg1[%c0_3, %c0_4] : memref<128x196xf32, #tpu.memory_space<vmem>>, vector<128x196xf32>
    %12 = arith.truncf %11 : vector<128x196xf32> to vector<128x196xbf16>
    %cst_5 = arith.constant dense<0.000000e+00> : vector<32x196xf32>
    %13 = tpu.matmul %10, %12, %cst_5 {dimension_numbers = #tpu.dot_dimension_numbers<[1], [0], [0], [1], [0, 0, 1, 1], [], []>} : vector<32x128xbf16>, vector<128x196xbf16>, vector<32x196xf32> -> vector<32x196xf32>
    %cst_6 = arith.constant dense<0.000000e+00> : vector<32xf32>
    %14 = vector.multi_reduction <add>, %13, %cst_6 [1] : vector<32x196xf32> to vector<32xf32>
    %15 = vector.shape_cast %14 : vector<32xf32> to vector<32x1xf32>
    %cst_7 = arith.constant 0.00510204071 : f32
    %16 = vector.broadcast %cst_7 : f32 to vector<32x1xf32>
    %17 = arith.mulf %15, %16 : vector<32x1xf32>
    %18 = vector.broadcast %17 : vector<32x1xf32> to vector<32x196xf32>
    %19 = arith.subf %13, %18 : vector<32x196xf32>
    %20 = arith.mulf %19, %19 : vector<32x196xf32>
    %cst_8 = arith.constant dense<0.000000e+00> : vector<32xf32>
    %21 = vector.multi_reduction <add>, %20, %cst_8 [1] : vector<32x196xf32> to vector<32xf32>
    %22 = vector.shape_cast %21 : vector<32xf32> to vector<32x1xf32>
    %cst_9 = arith.constant 0.00510204071 : f32
    %23 = vector.broadcast %cst_9 : f32 to vector<32x1xf32>
    %24 = arith.mulf %22, %23 : vector<32x1xf32>
    %cst_10 = arith.constant 9.99999974E-6 : f32
    %25 = vector.broadcast %cst_10 : f32 to vector<32x1xf32>
    %26 = arith.addf %24, %25 : vector<32x1xf32>
    %27 = math.rsqrt %26 : vector<32x1xf32>
    %c0_11 = arith.constant 0 : index
    %c0_12 = arith.constant 0 : index
    %28 = vector.load %arg4[%c0_11, %c0_12] : memref<32x1xf32, #tpu.memory_space<vmem>>, vector<32x1xf32>
    %29 = arith.mulf %27, %28 : vector<32x1xf32>
    %30 = vector.broadcast %29 : vector<32x1xf32> to vector<32x196xf32>
    %31 = arith.mulf %19, %30 : vector<32x196xf32>
    %c0_13 = arith.constant 0 : index
    %c0_14 = arith.constant 0 : index
    %32 = vector.load %arg5[%c0_13, %c0_14] : memref<32x1xf32, #tpu.memory_space<vmem>>, vector<32x1xf32>
    %33 = vector.broadcast %32 : vector<32x1xf32> to vector<32x196xf32>
    %34 = arith.addf %31, %33 : vector<32x196xf32>
    %c0_15 = arith.constant 0 : index
    %c0_16 = arith.constant 0 : index
    %35 = vector.load %arg6[%c0_15, %c0_16] : memref<32x196xf32, #tpu.memory_space<vmem>>, vector<32x196xf32>
    tpu.vector_store %arg6[%c0_15, %c0_16], %34 {strides = array<i32>} : memref<32x196xf32, #tpu.memory_space<vmem>>, vector<32x196xf32>,
    return
  }
  func.func @transform_0(%arg0: i32) -> (i32, i32) {
    %c0_i32 = arith.constant 0 : i32
    %c0_i32_0 = arith.constant 0 : i32
    %c0_i32_1 = arith.constant 0 : i32
    return %c0_i32, %c0_i32_0 : i32, i32
  }
  func.func @transform_1(%arg0: i32) -> (i32, i32) {
    %c0_i32 = arith.constant 0 : i32
    %c0_i32_0 = arith.constant 0 : i32
    %c0_i32_1 = arith.constant 0 : i32
    return %c0_i32, %c0_i32_0 : i32, i32
  }
  func.func @transform_2(%arg0: i32) -> (i32, i32) {
    %c0_i32 = arith.constant 0 : i32
    %c0_i32_0 = arith.constant 0 : i32
    return %arg0, %c0_i32 : i32, i32
  }
  func.func @transform_3(%arg0: i32) -> (i32, i32) {
    %c0_i32 = arith.constant 0 : i32
    %c0_i32_0 = arith.constant 0 : i32
    return %arg0, %c0_i32 : i32, i32
  }
  func.func @transform_4(%arg0: i32) -> (i32, i32) {
    %c0_i32 = arith.constant 0 : i32
    %c0_i32_0 = arith.constant 0 : i32
    return %arg0, %c0_i32 : i32, i32
  }
  func.func @transform_5(%arg0: i32) -> (i32, i32) {
    %c0_i32 = arith.constant 0 : i32
    %c0_i32_0 = arith.constant 0 : i32
    return %arg0, %c0_i32 : i32, i32
  }
}

</mosaic_0001>

<bundles_post_ra>
// kernel: tpu_custom_call.1
= control target key start
LH: loop header
LB: loop body
LE: loop exit
PB: predicated region body
PF: predicated region fallthrough
CT: control target
= control target key end

     0   :  { %10 = vsyncpa [#allocation3], 0  ;;  %s1098_s0 = inlined_call_operand.vmem [shape: f32[128,196], index: 0, kind: input, shape index: {}]   ;;  %s1099_s1 = inlined_call_operand.vmem [shape: f32[1,128], index: 1, kind: input, shape index: {}]   ;;  %s1100_s2 = inlined_call_operand.vmem [shape: f32[64,128], index: 2, kind: input, shape index: {}]   ;;  %s1101_s3 = inlined_call_operand.vmem [shape: f32[64,1], index: 3, kind: input, shape index: {}]   ;;  %s1102_s4 = inlined_call_operand.vmem [shape: f32[64,1], index: 4, kind: input, shape index: {}]   ;;  %s1103_s5 = inlined_call_operand.hbm [shape: f32[64,196], index: 5, kind: output, shape index: {}]  }
   0x1   :  { %12 = vsyncpa [#allocation3 + $0x1], 0  ;;  %s825_s18 = smov 0   ;;  %s827_s19 = smov 0  }
   0x2   :  { %s829_s20 = smov 0   ;;  %s831_s21 = smov 0  }
   0x3 LB: > { %s846_s22 = sadd.s32 4294967295, %s789_s21   ;;  %s637_s23 = sadd.s32 4294967294, %s789_s21   ;;  %s789_s21 = sphi %s831_s21, %s1109_s21   ;;  %s785_s20 = sphi %s829_s20, %s1108_s20   ;;  %s781_s19 = sphi %s827_s19, %s1107_s19   ;;  %s777_s18 = sphi %s825_s18, %s1106_s18  }
   0x4   : > { %s850_s24 = sadd.s32 1, %s789_s21   ;;  %s145_s25 = sadd.s32 1, %s785_s20 }
   0x5   : > { %s142_s26 = ssub.s32 %s789_s21, %s850_s24  ;;  %p155_p0 = scmp.ne.s32.totalorder %s785_s20, %s781_s19 }
   0x6   : > { %p143_p1 = scmp.eq.s32.totalorder %s142_s26, 0  ;;  %p156_p2 = scmp.eq.s32.totalorder %s846_s22, 1 }
   0x7   : > { %p161_p3 = scmp.ne.s32.totalorder %s781_s19, %s777_s18  ;;  %p162_p4 = scmp.eq.s32.totalorder %s637_s23, 1 }
   0x8   : > { %s861_s27 = scalar_select %p143_p1, %s785_s20, %s145_s25  }
   0x9   : > { %p863_p5 = por %p156_p2, %p155_p0  ;;  %p867_p6 = por %p162_p4, %p161_p3 }
   0xa   : > { %p640_p7 = scmp.ge.s32.totalorder %s789_s21, 1  ;;  %p213_p8 = scmp.lt.s32.totalorder %s789_s21, 3 }
   0xc   : > { %p214_p9 = pnand %p640_p7, %p213_p8 }
   0xd   : > { %s642_s25 = sshll.u32 (!%p214_p9), %s846_s22, 2  ;;  %s248_s23 = sand.u32 (!%p214_p9), 1, %s781_s19  }
   0xe   : > { %217 = sbr.rel (%p214_p9) target bundleno = 726 (0x2d6), region = 40  ;;  %p252_p10 = scmp.lt.s32.totalorder (!%p214_p9), %s642_s25, 7 }
   0xf   : > { %s656_s30 = sshll.u32 (!%p214_p9), %s846_s22, 10  ;;  %s1058_s22 = scalar_lea.sflag (!%p214_p9), [#allocation3], %s248_s23 }
  0x10   : > { %s1051_s9 = scalar_lea.hbm (!%p214_p9), %s1103_s5, %s656_s30 }
  0x13   : > { %v323_v0 = vld [vmem:[%s1098_s0 + $0xe8] sm:$0xff]  ;;  %v325_v1 = vld [vmem:[%s1098_s0 + $0xf8] sm:$0xff]  ;;  %v322_v2 = vld [vmem:[%s1098_s0 + $0xe0] sm:$0xff]  ;;  %v791_v7 = vmov 0   ;;  %s1111_s25 = smov (!%p252_p10, %s642_s25), 7  ;;  %v288_v53 = vlaneseq  ;;  %vm395_vm0 = vcmask 556032  }
  0x14   : > { %v341_v3 = vpack.c.bf16 %v325_v1, %v323_v0  ;;  %v324_v4 = vld [vmem:[%s1098_s0 + $0xf0] sm:$0xff]  ;;  %v319_v5 = vld [vmem:[%s1098_s0 + $0xc8] sm:$0xff]  ;;  %v321_v6 = vld [vmem:[%s1098_s0 + $0xd8] sm:$0xff]  ;;  %374 = vmatprep.mubr.bf16.mxu0 %v791_v7  ;;  %384 = vmatprep.mubr.bf16.mxu1 %v791_v7  ;;  %s973_s8 = sshll.u32 %s1111_s25, 3  ;;  %s641_s25 = sshll.u32 %s248_s23, 6 }
  0x15   : > { %v340_v8 = vpack.c.bf16 %v324_v4, %v322_v2  ;;  %v339_v9 = vpack.c.bf16 %v321_v6, %v319_v5  ;;  %v318_v10 = vld [vmem:[%s1098_s0 + $0xc0] sm:$0xff]  ;;  %v320_v11 = vld [vmem:[%s1098_s0 + $0xd0] sm:$0xff]  ;;  %v315_v12 = vld [vmem:[%s1098_s0 + $0xa8] sm:$0xff]  ;;  %716 = vset.pattern.permute.xlu1 %v791_v7  ;;  %715 = vset.pattern.permute.xlu0 %v791_v7  ;;  %s255_s11 = scalar_lea.vmem %s1100_s2, %s973_s8  ;;  %v289_v54 = vshrl.u32 %v288_v53, 7  ;;  %s1023_s14 = scalar_lea.vmem %s1102_s4, %s973_s8 }
  0x16   : > { %342 = vmatprep.subr.bf16.mxu0 %v341_v3  ;;  %657 = vmatprep.subr.bf16.mxu1 %v341_v3  ;;  %v317_v13 = vld [vmem:[%s1098_s0 + $0xb8] sm:$0xff]  ;;  %v338_v14 = vpack.c.bf16 %v320_v11, %v318_v10  ;;  %v314_v16 = vld [vmem:[%s1098_s0 + $0xa0] sm:$0xff]  ;;  %v316_v17 = vld [vmem:[%s1098_s0 + $0xb0] sm:$0xff]  ;;  %s261_s17 = scalar_lea.vmem %s1101_s3, %s973_s8  ;;  %s250_s26 = scalar_lea.vmem [#allocation2], %s641_s25 }
  0x17   : > { %343 = vmatpush1.bf16.msra.mxu0 %v340_v8  ;;  %665 = vmatpush1.bf16.msra.mxu1 %v340_v8  ;;  %v337_v15 = vpack.c.bf16 %v317_v13, %v315_v12  ;;  %v311_v18 = vld [vmem:[%s1098_s0 + $0x88] sm:$0xff]  ;;  %v313_v19 = vld [vmem:[%s1098_s0 + $0x98] sm:$0xff]  ;;  %v336_v20 = vpack.c.bf16 %v316_v17, %v314_v16  ;;  %v310_v22 = vld [vmem:[%s1098_s0 + $0x80] sm:$0xff]  ;;  %v290_v61 = vsub.s32 0, %v289_v54  ;;  %s551_s6 = sshll.u32 %s250_s26, 4  ;;  %s1053_s6 = int_to_ptr.vmem [resolvable:$true] %s551_s6 }
  0x18   : > { %344 = vmatprep.subr.bf16.mxu0 %v339_v9  ;;  %658 = vmatprep.subr.bf16.mxu1 %v339_v9  ;;  %v335_v21 = vpack.c.bf16 %v313_v19, %v311_v18  ;;  %v312_v23 = vld [vmem:[%s1098_s0 + $0x90] sm:$0xff]  ;;  %v307_v24 = vld [vmem:[%s1098_s0 + $0x68] sm:$0xff]  ;;  %v309_v25 = vld [vmem:[%s1098_s0 + $0x78] sm:$0xff]  ;;  %s729_s10 = scalar_lea.vmem %s1053_s6, 1024 }
  0x19   : > { %v271_v26 = vld [vmem:[%s1099_s1] sm:$0x1]  ;;  %v334_v28 = vpack.c.bf16 %v312_v23, %v310_v22  ;;  %v333_v29 = vpack.c.bf16 %v309_v25, %v307_v24  ;;  %v308_v31 = vld [vmem:[%s1098_s0 + $0x70] sm:$0xff]  ;;  %v303_v32 = vld [vmem:[%s1098_s0 + $0x48] sm:$0xff]  ;;  %p730_p11 = scmp.ne.s32.totalorder %s1053_s6, %s729_s10 }
  0x1a   : > { %v648_v27 = vmul.f32 -1.442695, %v271_v26  ;;  %v306_v30 = vld [vmem:[%s1098_s0 + $0x60] sm:$0xff]  ;;  %v305_v33 = vld [vmem:[%s1098_s0 + $0x58] sm:$0xff]  ;;  %v304_v37 = vld [vmem:[%s1098_s0 + $0x50] sm:$0xff] }
  0x1b   : > { %345 = vmatpush1.bf16.msra.mxu0 %v338_v14  ;;  %666 = vmatpush1.bf16.msra.mxu1 %v338_v14  ;;  %v332_v34 = vpack.c.bf16 %v308_v31, %v306_v30  ;;  %v331_v35 = vpack.c.bf16 %v305_v33, %v303_v32  ;;  %v302_v36 = vld [vmem:[%s1098_s0 + $0x40] sm:$0xff]  ;;  %v299_v38 = vld [vmem:[%s1098_s0 + $0x28] sm:$0xff]  ;;  %v301_v39 = vld [vmem:[%s1098_s0 + $0x38] sm:$0xff]  ;;  %p731_p12 = pnand %p730_p11, %p863_p5 }
  0x1c   : > { %346 = vmatprep.subr.bf16.mxu0 %v337_v15  ;;  %659 = vmatprep.subr.bf16.mxu1 %v337_v15  ;;  %717 = vpow2.f32 %v648_v27  ;;  %v330_v40 = vpack.c.bf16 %v304_v37, %v302_v36  ;;  %v329_v41 = vpack.c.bf16 %v301_v39, %v299_v38  ;;  %v298_v42 = vld [vmem:[%s1098_s0 + $0x20] sm:$0xff]  ;;  %v300_v43 = vld [vmem:[%s1098_s0 + $0x30] sm:$0xff]  ;;  %v295_v44 = vld [vmem:[%s1098_s0 + $0x8] sm:$0xff] }
  0x1d   : > { %v297_v45 = vld [vmem:[%s1098_s0 + $0x18] sm:$0xff]  ;;  %v328_v46 = vpack.c.bf16 %v300_v43, %v298_v42  ;;  %v294_v48 = vld [vmem:[%s1098_s0] sm:$0xff]  ;;  %v296_v49 = vld [vmem:[%s1098_s0 + $0x10] sm:$0xff]  ;;  %p732_p13 = pneg %p731_p12 }
  0x1e   : > { %v327_v47 = vpack.c.bf16 %v297_v45, %v295_v44  ;;  %v326_v52 = vpack.c.bf16 %v296_v49, %v294_v48  ;;  %v278_v55 = vld [vmem:[%s255_s11] sm:$0xff]  ;;  %v279_v57 = vld [vmem:[%s255_s11 + $0x8] sm:$0xff]  ;;  %v280_v58 = vld [vmem:[%s255_s11 + $0x10] sm:$0xff] }
  0x1f   : > { %347 = vmatpush1.bf16.msra.mxu0 %v336_v20  ;;  %667 = vmatpush1.bf16.msra.mxu1 %v336_v20  ;;  %v281_v59 = vld [vmem:[%s255_s11 + $0x18] sm:$0xff]  ;;  %v282_v62 = vpack.c.bf16 %v279_v57, %v278_v55  ;;  %v497_v53 = vld [vmem:[%s1023_s14 + $0x8] sm:$0xff]  ;;  %v498_v54 = vld [vmem:[%s1023_s14 + $0x10] sm:$0xff]  ;;  %s792_s11 = smov [#allocation2]  }
  0x20   : > { %348 = vmatprep.subr.bf16.mxu0 %v335_v21  ;;  %660 = vmatprep.subr.bf16.mxu1 %v335_v21  ;;  %v283_v0 = vpack.c.bf16 %v281_v59, %v280_v58  ;;  %s733_s12 = sshll.u32 %s792_s11, 4  ;;  %s734_s12 = int_to_ptr.vmem [resolvable:$false] %s733_s12 }
  0x21   : > { %s735_s13 = scalar_lea.vmem %s734_s12, 2048  ;;  %p736_p0 = scmp.lt.s32.totalorder %s1053_s6, %s734_s12 }
  0x22   : > { %p737_p1 = scmp.lt.s32.totalorder %s735_s13, %s729_s10 }
  0x23   : > { %349 = vmatpush1.bf16.msra.mxu0 %v334_v28  ;;  %668 = vmatpush1.bf16.msra.mxu1 %v334_v28 }
  0x24   : > { %350 = vmatprep.subr.bf16.mxu0 %v333_v29  ;;  %661 = vmatprep.subr.bf16.mxu1 %v333_v29  ;;  %p738_p2 = por %p737_p1, %p736_p0 }
  0x26   : > { %p739_p3 = pnand %p738_p2, %p732_p13 }
  0x27   : > { %351 = vmatpush1.bf16.msra.mxu0 %v332_v34  ;;  %669 = vmatpush1.bf16.msra.mxu1 %v332_v34 }
  0x28   : > { %352 = vmatprep.subr.bf16.mxu0 %v331_v35  ;;  %662 = vmatprep.subr.bf16.mxu1 %v331_v35 }
  0x29   : > { %v718_v50 = vpop.eup %717 }
  0x2a   : > { %v275_v51 = vadd.f32 1.0, %v718_v50 }
  0x2b   : > { %353 = vmatpush1.bf16.msra.mxu0 %v330_v40  ;;  %670 = vmatpush1.bf16.msra.mxu1 %v330_v40 }
  0x2c   : > { %354 = vmatprep.subr.bf16.mxu0 %v329_v41  ;;  %663 = vmatprep.subr.bf16.mxu1 %v329_v41  ;;  %719 = vrcp.f32 %v275_v51 }
  0x2f   : > { %355 = vmatpush1.bf16.msra.mxu0 %v328_v46  ;;  %671 = vmatpush1.bf16.msra.mxu1 %v328_v46 }
  0x30   : > { %356 = vmatprep.subr.bf16.mxu0 %v327_v47  ;;  %664 = vmatprep.subr.bf16.mxu1 %v327_v47 }
  0x33   : > { %357 = vmatpush1.bf16.msra.mxu0 %v326_v52  ;;  %672 = vmatpush1.bf16.msra.mxu1 %v326_v52  ;;  %v496_v52 = vld [vmem:[%s1023_s14] sm:$0xff] }
  0x39   : > { %v720_v56 = vpop.eup %719 }
  0x3a   : > { %v284_v60 = vpack.c.bf16 %v720_v56, %v720_v56 }
  0x3c   : > { %v286_v63 = vpack.i.b16 %v284_v60, %v284_v60 }
  0x3e   : > { %v291_v1 = vrot.slane %v286_v63, %v290_v61 }
  0x40   : > { %v292_v2 = vmul.bf16 %v291_v1, %v282_v62  ;;  %v293_v3 = vmul.bf16 %v291_v1, %v283_v0 }
  0x42   : > { %375 = vmatmul.mubr.bf16.vlgmr.msra.gmra.mxu0 %v292_v2  ;;  %385 = vmatmul.mubr.bf16.vlgmr.msra.gmra.mxu1 %v293_v3  ;;  %v460_v3 = vld [vmem:[%s261_s17] sm:$0xff] }
 0x102   : > { %v376_v4 = vpop.f32.mrf.mxu0  ;;  %v386_v5 = vpop.f32.mrf.mxu1 }
 0x104   : > { %v378_v6 = vpop.f32.mrf.mxu0  ;;  %v388_v7 = vpop.f32.mrf.mxu1 }
 0x105   : > { %v404_v8 = vsel %vm395_vm0, %v388_v7, 0.0  ;;  %v396_v9 = vsel %vm395_vm0, %v378_v6, 0.0 }
 0x106   : > { %v380_v10 = vpop.f32.mrf.mxu0  ;;  %v390_v11 = vpop.f32.mrf.mxu1  ;;  %v405_v12 = vadd.f32 %v404_v8, %v386_v5  ;;  %v397_v13 = vadd.f32 %v396_v9, %v376_v4 }
 0x108   : > { %406 = vadd.xlane.f32.xlu1 %v405_v12  ;;  %v392_v14 = vpop.f32.mrf.mxu1  ;;  %398 = vadd.xlane.f32.xlu0 %v397_v13  ;;  %v382_v15 = vpop.f32.mrf.mxu0  ;;  %v463_v13 = vld [vmem:[%s261_s17 + $0x18] sm:$0xff] }
 0x109   : > { %v408_v16 = vsel %vm395_vm0, %v392_v14, 0.0  ;;  %v400_v17 = vsel %vm395_vm0, %v382_v15, 0.0 }
 0x10a   : > { %v409_v18 = vadd.f32 %v408_v16, %v390_v11  ;;  %v401_v19 = vadd.f32 %v400_v17, %v380_v10 }
 0x10c   : > { %410 = vadd.xlane.f32.xlu1 %v409_v18  ;;  %402 = vadd.xlane.f32.xlu0 %v401_v19 }
 0x191   : > { %v407_v20 = vpop.xlane.xlu1 %406  ;;  %v399_v21 = vpop.xlane.xlu0 %398 }
 0x192   : > { %v414_v22 = vmul.f32 0.0051020407, %v407_v20  ;;  %v412_v23 = vmul.f32 0.0051020407, %v399_v21 }
 0x194   : > { %v983_v24 = vsub.f32 %v388_v7, %v414_v22  ;;  %v985_v25 = vsub.f32 %v376_v4, %v412_v23  ;;  %v987_v26 = vsub.f32 %v378_v6, %v412_v23  ;;  %v989_v27 = vsub.f32 %v386_v5, %v414_v22  ;;  %v462_v6 = vld [vmem:[%s261_s17 + $0x10] sm:$0xff] }
 0x195   : > { %v411_v28 = vpop.xlane.xlu1 %410  ;;  %v403_v29 = vpop.xlane.xlu0 %402 }
 0x196   : > { %v415_v30 = vmul.f32 0.0051020407, %v411_v28  ;;  %v413_v31 = vmul.f32 0.0051020407, %v403_v29  ;;  %v424_v32 = vmul.f32 %v985_v25, %v985_v25  ;;  %v425_v33 = vmul.f32 %v987_v26, %v987_v26 }
 0x197   : > { %v429_v34 = vmul.f32 %v983_v24, %v983_v24  ;;  %v428_v41 = vmul.f32 %v989_v27, %v989_v27 }
 0x198   : > { %v997_v35 = vsub.f32 %v392_v14, %v415_v30  ;;  %v999_v36 = vsub.f32 %v380_v10, %v413_v31  ;;  %v1001_v37 = vsub.f32 %v382_v15, %v413_v31  ;;  %v1003_v38 = vsub.f32 %v390_v11, %v415_v30  ;;  %v461_v10 = vld [vmem:[%s261_s17 + $0x8] sm:$0xff]  ;;  %v499_v15 = vld [vmem:[%s1023_s14 + $0x18] sm:$0xff] }
 0x199   : > { %v432_v39 = vsel %vm395_vm0, %v425_v33, 0.0  ;;  %v440_v44 = vsel %vm395_vm0, %v429_v34, 0.0 }
 0x19a   : > { %v433_v40 = vadd.f32 %v432_v39, %v424_v32  ;;  %v426_v42 = vmul.f32 %v999_v36, %v999_v36  ;;  %v427_v43 = vmul.f32 %v1001_v37, %v1001_v37  ;;  %v431_v45 = vmul.f32 %v997_v35, %v997_v35 }
 0x19b   : > { %v430_v48 = vmul.f32 %v1003_v38, %v1003_v38  ;;  %v441_v49 = vadd.f32 %v440_v44, %v428_v41 }
 0x19c   : > { %434 = vadd.xlane.f32.xlu0 %v433_v40  ;;  %v436_v46 = vsel %vm395_vm0, %v427_v43, 0.0  ;;  %v444_v50 = vsel %vm395_vm0, %v431_v45, 0.0 }
 0x19d   : > { %v437_v47 = vadd.f32 %v436_v46, %v426_v42  ;;  %v445_v51 = vadd.f32 %v444_v50, %v430_v48 }
 0x19f   : > { %438 = vadd.xlane.f32.xlu1 %v437_v47 }
 0x1a0   : > { %442 = vadd.xlane.f32.xlu0 %v441_v49 }
 0x1a3   : > { %446 = vadd.xlane.f32.xlu1 %v445_v51 }
 0x1b4   : > { %502 = vperm.xlu1 %716, %v496_v52  }
 0x1b8   : > { %507 = vperm.xlu1 %716, %v497_v53  }
 0x1bc   : > { %512 = vperm.xlu1 %716, %v498_v54  }
 0x225   : > { %v435_v55 = vpop.xlane.xlu0 %434 }
 0x226   : > { %v448_v56 = vmul.f32 0.0051020407, %v435_v55 }
 0x228   : > { %v452_v57 = vadd.f32 1e-05, %v448_v56  ;;  %v439_v58 = vpop.xlane.xlu1 %438 }
 0x229   : > { %v449_v59 = vmul.f32 0.0051020407, %v439_v58  ;;  %v443_v60 = vpop.xlane.xlu0 %442 }
 0x22a   : > { %721 = vrsqrt.f32 %v452_v57  ;;  %v450_v61 = vmul.f32 0.0051020407, %v443_v60 }
 0x22b   : > { %v453_v62 = vadd.f32 1e-05, %v449_v59 }
 0x22c   : > { %v454_v63 = vadd.f32 1e-05, %v450_v61  ;;  %v447_v0 = vpop.xlane.xlu1 %446 }
 0x22d   : > { %v451_v1 = vmul.f32 0.0051020407, %v447_v0 }
 0x22e   : > { %723 = vrsqrt.f32 %v454_v63 }
 0x22f   : > { %725 = vrsqrt.f32 %v453_v62  ;;  %v455_v2 = vadd.f32 1e-05, %v451_v1 }
 0x230   : > { %v503_v16 = vpop.permute.xlu1 %502 }
 0x231   : > { %727 = vrsqrt.f32 %v455_v2 }
 0x234   : > { %v508_v17 = vpop.permute.xlu1 %507 }
 0x237   : > { %v722_v4 = vpop.eup %721 }
 0x238   : > { %v464_v5 = vmul.f32 %v722_v4, %v460_v3  ;;  %v513_v18 = vpop.permute.xlu1 %512 }
 0x23a   : > { %470 = vperm.xlu0 %715, %v464_v5  }
 0x23b   : > { %v724_v7 = vpop.eup %723 }
 0x23c   : > { %v466_v8 = vmul.f32 %v724_v7, %v462_v6  ;;  %v726_v9 = vpop.eup %725 }
 0x23d   : > { %v465_v11 = vmul.f32 %v726_v9, %v461_v10 }
 0x23e   : > { %480 = vperm.xlu1 %716, %v466_v8   ;;  %v728_v12 = vpop.eup %727 }
 0x23f   : > { %v467_v14 = vmul.f32 %v728_v12, %v463_v13 }
 0x242   : > { %475 = vperm.xlu1 %716, %v465_v11  }
 0x246   : > { %485 = vperm.xlu1 %716, %v467_v14  }
 0x24a   : > { %517 = vperm.xlu1 %716, %v499_v15  }
 0x2b5   : > { %v471_v19 = vpop.permute.xlu0 %470 }
 0x2b6   : > { %v488_v20 = vmul.f32 %v471_v19, %v985_v25  ;;  %v489_v21 = vmul.f32 %v471_v19, %v987_v26 }
 0x2b8   : > { %v520_v22 = vadd.f32 %v503_v16, %v488_v20  ;;  %v521_v23 = vadd.f32 %v503_v16, %v489_v21 }
 0x2b9   : > { %v481_v28 = vpop.permute.xlu1 %480 }
 0x2ba   : > { %528 = vst [vmem:[%s250_s26] sm:$0xff] %v520_v22  ;;  %529 = vst.msk [vmem:[%s250_s26 + $0x8] sm:$0xff] %vm395_vm0, %v521_v23  ;;  %v492_v29 = vmul.f32 %v481_v28, %v989_v27  ;;  %v493_v30 = vmul.f32 %v481_v28, %v983_v24 }
 0x2bc   : > { %v524_v31 = vadd.f32 %v513_v18, %v492_v29  ;;  %v525_v32 = vadd.f32 %v513_v18, %v493_v30 }
 0x2bd   : > { %v476_v33 = vpop.permute.xlu1 %475 }
 0x2be   : > { %532 = vst [vmem:[%s250_s26 + $0x20] sm:$0xff] %v524_v31  ;;  %533 = vst.msk [vmem:[%s250_s26 + $0x28] sm:$0xff] %vm395_vm0, %v525_v32  ;;  %v490_v25 = vmul.f32 %v476_v33, %v999_v36  ;;  %v491_v26 = vmul.f32 %v476_v33, %v1001_v37 }
 0x2c0   : > { %v522_v34 = vadd.f32 %v508_v17, %v490_v25  ;;  %v523_v39 = vadd.f32 %v508_v17, %v491_v26 }
 0x2c1   : > { %v486_v40 = vpop.permute.xlu1 %485 }
 0x2c2   : > { %530 = vst [vmem:[%s250_s26 + $0x10] sm:$0xff] %v522_v34  ;;  %531 = vst.msk [vmem:[%s250_s26 + $0x18] sm:$0xff] %vm395_vm0, %v523_v39  ;;  %v494_v24 = vmul.f32 %v486_v40, %v1003_v38  ;;  %v495_v27 = vmul.f32 %v486_v40, %v997_v35 }
 0x2c5   : > { %v518_v41 = vpop.permute.xlu1 %517 }
 0x2c6   : > { %v526_v36 = vadd.f32 %v518_v41, %v494_v24  ;;  %v527_v37 = vadd.f32 %v518_v41, %v495_v27 }
 0x2c8   : > { %534 = vst [vmem:[%s250_s26 + $0x30] sm:$0xff] %v526_v36  ;;  %535 = vst.msk [vmem:[%s250_s26 + $0x38] sm:$0xff] %vm395_vm0, %v527_v37 }
 0x2c9   : > { %742 = shalt.err (!%p739_p3)
}
 0x2ca   : > { %s743_s14 = scalar_lea.hbm %s1051_s9, 1024  ;;  %s747_s17 = scalar_lea.hbm %s1103_s5, 2048 }
 0x2cb   : > { %p744_p4 = scmp.ne.s32.totalorder %s1051_s9, %s743_s14  ;;  %p748_p9 = scmp.lt.s32.totalorder %s1051_s9, %s1103_s5 }
 0x2cc   : > { %p749_p10 = scmp.lt.s32.totalorder %s747_s17, %s743_s14 }
 0x2cd   : > { %p745_p7 = pnand %p744_p4, %p863_p5 }
 0x2ce   : > { %p750_p11 = por %p749_p10, %p748_p9 }
 0x2cf   : > { %p746_p8 = pneg %p745_p7 }
 0x2d1   : > { %p751_p12 = pnand %p750_p11, %p746_p8 }
 0x2d3   : > { %754 = shalt.err (!%p751_p12)
}
 0x2d4   : > { %s793_s26 = smov 256   ;;  %s794_s30 = smov 16  }
 0x2d5   : > { %673 = dma.vmem_to_hbm [thread:$0]  (%p863_p5), %s1053_s6, 1024, %s1051_s9, %s1058_s22, %s793_s26, %s793_s26, %s794_s30  }
 0x2d6 PF: > { %p679_p13 = scmp.ge.s32.totalorder %s789_s21, 2  ;;  %s566_s7 = sand.u32 1, %s777_s18  }
 0x2d7   : > { %s567_s8 = scalar_lea.sflag [#allocation3], %s566_s7 }
 0x2d8   : > { %p676_p0 = pnand %p679_p13, %p867_p6 }
 0x2da   : > { %p677_p1 = pneg %p676_p0 }
 0x2dc   : > { %772 = dma.done.wait (%p677_p1), %s567_s8, 1024  }
 0x2dd   : > { %774 = vsyncadd (%p677_p1), %s567_s8, 4294966272  ;;  %p15_p2 = scmp.ge.s32.totalorder %s850_s24, 4   ;;  %s1106_s18 = smov %s781_s19 }
 0x2de   : > { %s1107_s19 = smov %s785_s20  ;;  %s1108_s20 = smov %s861_s27 }
 0x2df   : > { %s1109_s21 = smov %s850_s24  ;;  %17 = sbr.rel (!%p15_p2) target bundleno = 3 (0x3), region = 81 }
 0x2e4   :  { %572 = vsyncpa [#allocation3], 1 }
 0x2e5   :  { %574 = vsyncpa [#allocation3 + $0x1], 1 }

</bundles_post_ra>
